<compile_context>
chip_gen: v7x
topology: tpu7x:2x2x1
jax: 0.10.0
libtpu: 0.0.40
codegen_flags: <defaults>
</compile_context>

<pallas_src>
import jax
import jax.numpy as jnp
from jax.experimental import pallas as pl
from jax.experimental.pallas import tpu as pltpu

_LANES = 128  # lane width -> padded out-features


def _round_up(x, m):
    return ((x + m - 1) // m) * m


def _tile_b_max():
    """Max batch tile: 2048 on v7x (3.2 TB/s HBM, 32 MiB scoped VMEM fits ~16 MB
    footprint), 1024 elsewhere (stays under v5e's 16 MiB default scoped VMEM)."""
    try:
        kind = jax.devices()[0].device_kind.lower()
    except Exception:
        return 1024
    return 2048 if "v7" in kind else 1024


def _choose_tile_b(B, tile_b_max):
    if B <= 256:
        # Tiny batch: single block equal to the full batch dim (always a legal block).
        return B
    # Aim for >= 2 grid steps (keeps both v7x TensorCores busy); tile multiple of 8.
    return min(tile_b_max, _round_up(pl.cdiv(B, 2), 8))


def prepare_params(weight, bias):
    """One-time parameter prep (call at model init, NOT per forward).

    Pads out-features 10 -> 128 and transposes the weight to (784, 128) so the
    kernel output is lane-dense and the contraction is a plain [M,K]x[K,N] dot.
    """
    out_features, D = weight.shape
    w_pad_t = (
        jnp.zeros((D, _LANES), weight.dtype).at[:, :out_features].set(weight.T)
    )
    b_pad = jnp.zeros((1, _LANES), bias.dtype).at[0, :out_features].set(bias)
    return w_pad_t, b_pad


def _linear_kernel(x_ref, w_ref, b_ref, o_ref):
    # x_ref: (TILE_B, 784)   -- one batch tile (last block may be ragged; OOB rows masked)
    # w_ref: (784, 128)      -- resident, pre-transposed, zero-padded cols 10..127
    # b_ref: (1, 128)        -- resident, zero-padded bias
    # o_ref: (TILE_B, 128)   -- lane-dense output tile
    acc = jnp.dot(x_ref[...], w_ref[...], preferred_element_type=jnp.float32)
    o_ref[...] = (acc + b_ref[...]).astype(o_ref.dtype)


def digit_simple_forward_padded(x, w_pad_t, b_pad):
    """Core forward: returns padded (B, 128) logits; columns 10..127 are exactly 0.

    Slice (or argmax over [:, :10]) in the consumer inside the same jit so the
    slice fuses instead of being a standalone HBM pass.
    """
    B, D = x.shape
    out_pad = w_pad_t.shape[1]

    tile_b = _choose_tile_b(B, _tile_b_max())
    n_blocks = pl.cdiv(B, tile_b)
    rows = n_blocks * tile_b  # rows actually streamed (incl. ragged-tail padding)

    cost = pl.CostEstimate(
        flops=2 * rows * D * out_pad,
        transcendentals=0,
        bytes_accessed=4 * (rows * D + D * out_pad + out_pad + rows * out_pad),
    )

    return pl.pallas_call(
        _linear_kernel,
        out_shape=jax.ShapeDtypeStruct((B, out_pad), jnp.float32),
        grid=(n_blocks,),
        in_specs=[
            pl.BlockSpec((tile_b, D), lambda i: (i, 0)),       # streamed batch tiles
            pl.BlockSpec((D, out_pad), lambda i: (0, 0)),      # weight stays resident
            pl.BlockSpec((1, out_pad), lambda i: (0, 0)),      # bias stays resident
        ],
        out_specs=pl.BlockSpec((tile_b, out_pad), lambda i: (i, 0)),
        compiler_params=pltpu.CompilerParams(
            dimension_semantics=("parallel",),                 # batch tiles independent
        ),
        cost_estimate=cost,
    )(x, w_pad_t, b_pad)


def digit_simple_forward(x, weight, bias):
    """Convenience wrapper matching PyTorch semantics: y = x @ weight.T + bias.

    For production, call prepare_params() once and use digit_simple_forward_padded
    inside your jit so param padding / output slicing don't cost per call.
    """
    w_pad_t, b_pad = prepare_params(weight, bias)
    y_pad = digit_simple_forward_padded(x, w_pad_t, b_pad)
    return y_pad[:, : weight.shape[0]]


if __name__ == "__main__":
    key = jax.random.PRNGKey(0)
    k_x, k_w, k_b = jax.random.split(key, 3)

    B, D, OUT = 2, 784, 10  # batch=2, flattened 28x28 MNIST image, 10 classes

    # Deterministic synthetic parameters (PyTorch-style uniform(-1/sqrt(D), 1/sqrt(D)))
    bound = 1.0 / jnp.sqrt(jnp.float32(D))
    weight = jax.random.uniform(k_w, (OUT, D), jnp.float32, -bound, bound)
    bias = jax.random.uniform(k_b, (OUT,), jnp.float32, -bound, bound)

    x = jax.random.normal(k_x, (B, D), jnp.float32)

    # One-time param prep, then a jitted forward that slices inside the same jit
    # (so the [:, :10] view fuses with the kernel output instead of being a
    # standalone HBM pass).
    w_pad_t, b_pad = prepare_params(weight, bias)

    @jax.jit
    def forward(x):
        return digit_simple_forward_padded(x, w_pad_t, b_pad)[:, :OUT]

    y = forward(x)
    jax.block_until_ready(y)

    # Sanity check against plain JAX reference
    y_ref = x @ weight.T + bias
    assert y.shape == (B, OUT)
    assert jnp.allclose(y, y_ref, atol=1e-4, rtol=1e-4)

    print("KERNEL_OK")
</pallas_src>

<mosaic_0001>
module attributes {stable_mosaic.version = 11 : i64} {
  func.func @_linear_kernel(%arg0: i32, %arg1: memref<2x784xf32, #tpu.memory_space<vmem>>, %arg2: memref<784x128xf32, #tpu.memory_space<vmem>>, %arg3: memref<1x128xf32, #tpu.memory_space<vmem>>, %arg4: memref<2x128xf32, #tpu.memory_space<vmem>>) attributes {dimension_semantics = [#tpu.dimension_semantics<parallel>], iteration_bounds = array<i64: 1>, scalar_prefetch = 0 : i64, scratch_operands = 0 : i64, tpu.core_type = #tpu.core_type<tc>, window_params = [{transform_indices = @transform_0, window_bounds = array<i64: 2, 784>}, {pipeline_mode = #tpu.pipeline_mode<synchronous>, transform_indices = @transform_1, window_bounds = array<i64: 784, 128>}, {pipeline_mode = #tpu.pipeline_mode<synchronous>, transform_indices = @transform_2, window_bounds = array<i64: 1, 128>}, {transform_indices = @transform_3, window_bounds = array<i64: 2, 128>}]} {
    %c0 = arith.constant 0 : index
    %c0_0 = arith.constant 0 : index
    %0 = vector.load %arg1[%c0, %c0_0] : memref<2x784xf32, #tpu.memory_space<vmem>>, vector<2x784xf32>
    %c0_1 = arith.constant 0 : index
    %c0_2 = arith.constant 0 : index
    %1 = vector.load %arg2[%c0_1, %c0_2] : memref<784x128xf32, #tpu.memory_space<vmem>>, vector<784x128xf32>
    %cst = arith.constant dense<0.000000e+00> : vector<2x128xf32>
    %2 = tpu.matmul %0, %1, %cst {dimension_numbers = #tpu.dot_dimension_numbers<[1], [0], [0], [1], [0, 0, 1, 1], [], []>} : vector<2x784xf32>, vector<784x128xf32>, vector<2x128xf32> -> vector<2x128xf32>
    %c0_3 = arith.constant 0 : index
    %c0_4 = arith.constant 0 : index
    %3 = vector.load %arg3[%c0_3, %c0_4] : memref<1x128xf32, #tpu.memory_space<vmem>>, vector<1x128xf32>
    %4 = vector.broadcast %3 : vector<1x128xf32> to vector<2x128xf32>
    %5 = arith.addf %2, %4 : vector<2x128xf32>
    %c0_5 = arith.constant 0 : index
    %c0_6 = arith.constant 0 : index
    %6 = vector.load %arg4[%c0_5, %c0_6] : memref<2x128xf32, #tpu.memory_space<vmem>>, vector<2x128xf32>
    tpu.vector_store %arg4[%c0_5, %c0_6], %5 {strides = array<i32>} : memref<2x128xf32, #tpu.memory_space<vmem>>, vector<2x128xf32>,
    return
  }
  func.func @transform_0(%arg0: i32) -> (i32, i32) {
    %c0_i32 = arith.constant 0 : i32
    %c0_i32_0 = arith.constant 0 : i32
    return %arg0, %c0_i32 : i32, i32
  }
  func.func @transform_1(%arg0: i32) -> (i32, i32) {
    %c0_i32 = arith.constant 0 : i32
    %c0_i32_0 = arith.constant 0 : i32
    %c0_i32_1 = arith.constant 0 : i32
    return %c0_i32, %c0_i32_0 : i32, i32
  }
  func.func @transform_2(%arg0: i32) -> (i32, i32) {
    %c0_i32 = arith.constant 0 : i32
    %c0_i32_0 = arith.constant 0 : i32
    %c0_i32_1 = arith.constant 0 : i32
    return %c0_i32, %c0_i32_0 : i32, i32
  }
  func.func @transform_3(%arg0: i32) -> (i32, i32) {
    %c0_i32 = arith.constant 0 : i32
    %c0_i32_0 = arith.constant 0 : i32
    return %arg0, %c0_i32 : i32, i32
  }
}

</mosaic_0001>

<bundles_post_ra>
// kernel: forward.1
= control target key start
LH: loop header
LB: loop body
LE: loop exit
PB: predicated region body
PF: predicated region fallthrough
CT: control target
= control target key end

     0   :  { %8 = vsyncpa [#allocation3], 0  ;;  %s874_s0 = inlined_call_operand.hbm [shape: f32[2,784], index: 0, kind: input, shape index: {}]   ;;  %s875_s1 = inlined_call_operand.hbm [shape: f32[784,128], index: 1, kind: input, shape index: {}]   ;;  %s876_s2 = inlined_call_operand.vmem [shape: f32[1,128], index: 2, kind: input, shape index: {}]   ;;  %s877_s3 = inlined_call_operand.hbm [shape: f32[2,128], index: 3, kind: output, shape index: {}]  }
   0x1   :  { %9 = vsyncpa [#allocation6], 0 }
   0x2   :  { %10 = vsyncpa [#allocation4], 0  ;;  %s788_s12 = smov [#allocation2]   ;;  %s789_s14 = smov [#allocation5]  }
   0x3   :  { %s17_s13 = sshll.u32 %s788_s12, 4  ;;  %s26_s15 = sshll.u32 %s789_s14, 4  ;;  %s18_s13 = int_to_ptr.vmem [resolvable:$true] %s17_s13  ;;  %s817_s15 = int_to_ptr.vmem [resolvable:$true] %s26_s15 }
   0x4   :  { %s716_s18 = scalar_lea.hbm %s874_s0, 224 }
   0x5   :  { %p717_p0 = scmp.ne.s32.totalorder %s874_s0, %s716_s18  ;;  %p720_p1 = scmp.lt.u32.totalorder %s716_s18, %s874_s0 }
   0x7   :  { %p722_p2 = pnand %p720_p1, %p717_p0 }
   0x9   :  { %725 = shalt.err (!%p722_p2)
}
   0xa   :  { %s726_s23 = scalar_lea.vmem %s18_s13, 224  ;;  %p731_p4 = scmp.lt.s32.totalorder %s18_s13, %s18_s13 }
   0xb   :  { %p727_p3 = scmp.ne.s32.totalorder %s18_s13, %s726_s23  ;;  %p732_p5 = scmp.lt.s32.totalorder %s726_s23, %s726_s23 }
   0xd   :  { %p733_p6 = por %p732_p5, %p731_p4 }
   0xf   :  { %p734_p7 = pnand %p733_p6, %p727_p3 }
  0x11   :  { %737 = shalt.err (!%p734_p7)
}
  0x12   :  { %20 = dma.hbm_to_vmem [thread:$0]  %s874_s0, 224, %s18_s13, [#allocation3]  }
  0x13   :  { %s738_s28 = scalar_lea.hbm %s875_s1, 12544 }
  0x14   :  { %p739_p8 = scmp.ne.s32.totalorder %s875_s1, %s738_s28  ;;  %p742_p9 = scmp.lt.u32.totalorder %s738_s28, %s875_s1 }
  0x16   :  { %p744_p10 = pnand %p742_p9, %p739_p8 }
  0x18   :  { %747 = shalt.err (!%p744_p10)
}
  0x19   :  { %s748_s6 = scalar_lea.vmem %s817_s15, 12544  ;;  %p753_p12 = scmp.lt.s32.totalorder %s817_s15, %s817_s15 }
  0x1a   :  { %p749_p11 = scmp.ne.s32.totalorder %s817_s15, %s748_s6  ;;  %p754_p13 = scmp.lt.s32.totalorder %s748_s6, %s748_s6 }
  0x1c   :  { %p755_p0 = por %p754_p13, %p753_p12 }
  0x1e   :  { %p756_p1 = pnand %p755_p0, %p749_p11 }
  0x20   :  { %759 = shalt.err (!%p756_p1)
}
  0x21   :  { %s790_s0 = smov 128   ;;  %s791_s7 = smov 8  }
  0x22   :  { %32 = dma.hbm_to_vmem [thread:$0]  %s875_s1, 12544, %s817_s15, [#allocation6], %s790_s0, %s790_s0, %s791_s7  }
  0x23   :  { %782 = dma.done.wait [#allocation3], 224  }
  0x24   :  { %783 = vsyncadd [#allocation3], 4294967072 }
  0x25   :  { %784 = dma.done.wait [#allocation6], 12544  }
  0x26   :  { %785 = vsyncadd [#allocation6], 4294954752  ;;  %v59_v0 = vld [vmem:[#allocation5 + $0x80] sm:$0xff]  ;;  %v60_v1 = vld [vmem:[#allocation5 + $0x88] sm:$0xff]  ;;  %v792_v43 = vmov 1983009808   ;;  %v154_v45 = vlaneseq }
  0x27   :  { %v43_v2 = vld [vmem:[#allocation5] sm:$0xff]  ;;  %v606_v3 = vpack.c.bf16 %v60_v1, %v59_v0  ;;  %v44_v4 = vld [vmem:[#allocation5 + $0x8] sm:$0xff]  ;;  %v61_v11 = vld [vmem:[#allocation5 + $0x90] sm:$0xff]  ;;  %v152_v44 = vunpack.c.l.s4 %v792_v43  ;;  %vm794_vm0 = vmmov 0   ;;  %vm189_vm1 = vcmask 130048   ;;  %s796_s11 = smov [#allocation7]  }
  0x28   :  { %v91_v5 = vld [vmem:[#allocation5 + $0x180] sm:$0xff]  ;;  %v92_v6 = vld [vmem:[#allocation5 + $0x188] sm:$0xff]  ;;  %v608_v7 = vpack.c.bf16 %v44_v4, %v43_v2  ;;  %v62_v13 = vld [vmem:[#allocation5 + $0x98] sm:$0xff]  ;;  %v155_v60 = vshrl.u32 %v154_v45, 7  ;;  %s479_s12 = sshll.u32 %s796_s11, 4  ;;  %s480_s12 = int_to_ptr.vmem [resolvable:$true] %s479_s12 }
  0x29   :  { %v638_v8 = vpack.c.bf16 %v92_v6, %v91_v5  ;;  %v75_v9 = vld [vmem:[#allocation5 + $0x100] sm:$0xff]  ;;  %v76_v10 = vld [vmem:[#allocation5 + $0x108] sm:$0xff]  ;;  %607 = vmatprep.subr.bf16.mxu0 %v606_v3  ;;  %v45_v14 = vld [vmem:[#allocation5 + $0x10] sm:$0xff]  ;;  %v610_v16 = vpack.c.bf16 %v62_v13, %v61_v11  ;;  %v153_v59 = vunpack.c.0.s8 %v152_v44  ;;  %s760_s13 = scalar_lea.vmem %s480_s12, 32  ;;  %p765_p3 = scmp.lt.s32.totalorder %s480_s12, %s480_s12 }
  0x2a   :  { %v640_v12 = vpack.c.bf16 %v76_v10, %v75_v9  ;;  %v46_v15 = vld [vmem:[#allocation5 + $0x18] sm:$0xff]  ;;  %609 = vmatpush3.bf16.msra.mxu0 %v608_v7  ;;  %v93_v18 = vld [vmem:[#allocation5 + $0x190] sm:$0xff]  ;;  %v63_v23 = vld [vmem:[#allocation5 + $0xa0] sm:$0xff]  ;;  %p761_p2 = scmp.ne.s32.totalorder %s480_s12, %s760_s13  ;;  %p766_p4 = scmp.lt.s32.totalorder %s760_s13, %s760_s13 }
  0x2b   :  { %639 = vmatprep.subr.bf16.mxu1 %v638_v8  ;;  %v612_v17 = vpack.c.bf16 %v46_v15, %v45_v14  ;;  %v94_v19 = vld [vmem:[#allocation5 + $0x198] sm:$0xff]  ;;  %v77_v20 = vld [vmem:[#allocation5 + $0x110] sm:$0xff]  ;;  %v64_v24 = vld [vmem:[#allocation5 + $0xa8] sm:$0xff]  ;;  %611 = vmatprep.subr.bf16.mxu0 %v610_v16  ;;  %v848_v10 = vsub.s32 %v153_v59, %v155_v60 }
  0x2c   :  { %641 = vmatpush3.bf16.msra.mxu1 %v640_v12  ;;  %v642_v21 = vpack.c.bf16 %v94_v19, %v93_v18  ;;  %v78_v22 = vld [vmem:[#allocation5 + $0x118] sm:$0xff]  ;;  %v614_v26 = vpack.c.bf16 %v64_v24, %v63_v23  ;;  %v47_v27 = vld [vmem:[#allocation5 + $0x20] sm:$0xff]  ;;  %v48_v28 = vld [vmem:[#allocation5 + $0x28] sm:$0xff]  ;;  %p767_p5 = por %p766_p4, %p765_p3 }
  0x2d   :  { %v644_v25 = vpack.c.bf16 %v78_v22, %v77_v20  ;;  %v95_v29 = vld [vmem:[#allocation5 + $0x1a0] sm:$0xff]  ;;  %v96_v30 = vld [vmem:[#allocation5 + $0x1a8] sm:$0xff]  ;;  %v616_v33 = vpack.c.bf16 %v48_v28, %v47_v27  ;;  %v65_v35 = vld [vmem:[#allocation5 + $0xb0] sm:$0xff] }
  0x2e   :  { %643 = vmatprep.subr.bf16.mxu1 %v642_v21  ;;  %v79_v31 = vld [vmem:[#allocation5 + $0x120] sm:$0xff]  ;;  %v80_v32 = vld [vmem:[#allocation5 + $0x128] sm:$0xff]  ;;  %613 = vmatpush3.bf16.msra.mxu0 %v612_v17  ;;  %v646_v34 = vpack.c.bf16 %v96_v30, %v95_v29  ;;  %v66_v36 = vld [vmem:[#allocation5 + $0xb8] sm:$0xff]  ;;  %p768_p6 = pnand %p767_p5, %p761_p2 }
  0x2f   :  { %v49_v37 = vld [vmem:[#allocation5 + $0x30] sm:$0xff]  ;;  %615 = vmatprep.subr.bf16.mxu0 %v614_v26  ;;  %v648_v38 = vpack.c.bf16 %v80_v32, %v79_v31  ;;  %v618_v39 = vpack.c.bf16 %v66_v36, %v65_v35  ;;  %v50_v40 = vld [vmem:[#allocation5 + $0x38] sm:$0xff]  ;;  %v67_v49 = vld [vmem:[#allocation5 + $0xc0] sm:$0xff] }
  0x30   :  { %645 = vmatpush3.bf16.msra.mxu1 %v644_v25  ;;  %v97_v41 = vld [vmem:[#allocation5 + $0x1b0] sm:$0xff]  ;;  %v98_v42 = vld [vmem:[#allocation5 + $0x1b8] sm:$0xff]  ;;  %v68_v50 = vld [vmem:[#allocation5 + $0xc8] sm:$0xff]  ;;  %v620_v51 = vpack.c.bf16 %v50_v40, %v49_v37 }
  0x31   :  { %647 = vmatprep.subr.bf16.mxu1 %v646_v34  ;;  %v650_v46 = vpack.c.bf16 %v98_v42, %v97_v41  ;;  %v81_v47 = vld [vmem:[#allocation5 + $0x130] sm:$0xff]  ;;  %v82_v48 = vld [vmem:[#allocation5 + $0x138] sm:$0xff]  ;;  %v99_v52 = vld [vmem:[#allocation5 + $0x1c0] sm:$0xff]  ;;  %v622_v55 = vpack.c.bf16 %v68_v50, %v67_v49 }
  0x32   :  { %617 = vmatpush3.bf16.msra.mxu0 %v616_v33  ;;  %v100_v53 = vld [vmem:[#allocation5 + $0x1c8] sm:$0xff]  ;;  %v652_v54 = vpack.c.bf16 %v82_v48, %v81_v47  ;;  %v51_v56 = vld [vmem:[#allocation5 + $0x40] sm:$0xff]  ;;  %v69_v63 = vld [vmem:[#allocation5 + $0xd0] sm:$0xff] }
  0x33   :  { %619 = vmatprep.subr.bf16.mxu0 %v618_v39  ;;  %v52_v57 = vld [vmem:[#allocation5 + $0x48] sm:$0xff]  ;;  %v83_v58 = vld [vmem:[#allocation5 + $0x140] sm:$0xff]  ;;  %v654_v61 = vpack.c.bf16 %v100_v53, %v99_v52  ;;  %v70_v0 = vld [vmem:[#allocation5 + $0xd8] sm:$0xff] }
  0x34   :  { %649 = vmatpush3.bf16.msra.mxu1 %v648_v38  ;;  %v84_v62 = vld [vmem:[#allocation5 + $0x148] sm:$0xff]  ;;  %v101_v1 = vld [vmem:[#allocation5 + $0x1d0] sm:$0xff]  ;;  %v102_v2 = vld [vmem:[#allocation5 + $0x1d8] sm:$0xff]  ;;  %v624_v3 = vpack.c.bf16 %v52_v57, %v51_v56  ;;  %v626_v6 = vpack.c.bf16 %v70_v0, %v69_v63 }
  0x35   :  { %651 = vmatprep.subr.bf16.mxu1 %v650_v46  ;;  %v53_v4 = vld [vmem:[#allocation5 + $0x50] sm:$0xff]  ;;  %v656_v5 = vpack.c.bf16 %v84_v62, %v83_v58  ;;  %v54_v7 = vld [vmem:[#allocation5 + $0x58] sm:$0xff]  ;;  %v658_v11 = vpack.c.bf16 %v102_v2, %v101_v1  ;;  %v71_v12 = vld [vmem:[#allocation5 + $0xe0] sm:$0xff]  ;;  %v793_v62 = vmov 0.0|0.0  }
  0x36   :  { %621 = vmatpush3.bf16.msra.mxu0 %v620_v51  ;;  %v85_v8 = vld [vmem:[#allocation5 + $0x150] sm:$0xff]  ;;  %v86_v9 = vld [vmem:[#allocation5 + $0x158] sm:$0xff]  ;;  %v72_v13 = vld [vmem:[#allocation5 + $0xe8] sm:$0xff]  ;;  %v628_v16 = vpack.c.bf16 %v54_v7, %v53_v4 }
  0x37   :  { %623 = vmatprep.subr.bf16.mxu0 %v622_v55  ;;  %v103_v14 = vld [vmem:[#allocation5 + $0x1e0] sm:$0xff]  ;;  %v104_v15 = vld [vmem:[#allocation5 + $0x1e8] sm:$0xff]  ;;  %v660_v17 = vpack.c.bf16 %v86_v9, %v85_v8  ;;  %v41_v18 = vld [vmem:[#allocation2] sm:$0xff]  ;;  %v630_v19 = vpack.c.bf16 %v72_v13, %v71_v12  ;;  %v795_v8 = vmov 0.0  }
  0x38   :  { %653 = vmatpush3.bf16.msra.mxu1 %v652_v54  ;;  %v55_v20 = vld [vmem:[#allocation5 + $0x60] sm:$0xff]  ;;  %v56_v21 = vld [vmem:[#allocation5 + $0x68] sm:$0xff]  ;;  %v157_v23 = vrot.slane %v41_v18, %v848_v10  ;;  %v150_v24 = vcombine.high %v41_v18, %v41_v18  ;;  %v662_v25 = vpack.c.bf16 %v104_v15, %v103_v14  ;;  %v73_v27 = vld [vmem:[#allocation5 + $0xf0] sm:$0xff] }
  0x39   :  { %655 = vmatprep.subr.bf16.mxu1 %v654_v61  ;;  %v87_v22 = vld [vmem:[#allocation5 + $0x160] sm:$0xff]  ;;  %v88_v26 = vld [vmem:[#allocation5 + $0x168] sm:$0xff]  ;;  %v74_v28 = vld [vmem:[#allocation5 + $0xf8] sm:$0xff]  ;;  %v632_v33 = vpack.c.bf16 %v56_v21, %v55_v20 }
  0x3a   :  { %625 = vmatpush3.bf16.msra.mxu0 %v624_v3  ;;  %v105_v29 = vld [vmem:[#allocation5 + $0x1f0] sm:$0xff]  ;;  %v106_v30 = vld [vmem:[#allocation5 + $0x1f8] sm:$0xff]  ;;  %v165_v31 = vcombine.high %v157_v23, %v157_v23  ;;  %v164_v32 = vrot.slane %v150_v24, %v848_v10  ;;  %v664_v34 = vpack.c.bf16 %v88_v26, %v87_v22  ;;  %v634_v35 = vpack.c.bf16 %v74_v28, %v73_v27  ;;  %v123_v42 = vld [vmem:[#allocation5 + $0x280] sm:$0xff] }
  0x3b   :  { %627 = vmatprep.subr.bf16.mxu0 %v626_v6  ;;  %v57_v36 = vld [vmem:[#allocation5 + $0x70] sm:$0xff]  ;;  %v58_v37 = vld [vmem:[#allocation5 + $0x78] sm:$0xff]  ;;  %v666_v40 = vpack.c.bf16 %v106_v30, %v105_v29  ;;  %v124_v43 = vld [vmem:[#allocation5 + $0x288] sm:$0xff] }
  0x3c   :  { %657 = vmatpush3.bf16.msra.mxu1 %v656_v5  ;;  %v89_v38 = vld [vmem:[#allocation5 + $0x170] sm:$0xff]  ;;  %v166_v39 = vcombine.high %v164_v32, %v164_v32  ;;  %256 = vmatprep.mubr.f32.mxu0 %v165_v31  ;;  %v90_v41 = vld [vmem:[#allocation5 + $0x178] sm:$0xff]  ;;  %v636_v44 = vpack.c.bf16 %v58_v37, %v57_v36  ;;  %v670_v46 = vpack.c.bf16 %v124_v43, %v123_v42  ;;  %v107_v47 = vld [vmem:[#allocation5 + $0x200] sm:$0xff] }
  0x3d   :  { %659 = vmatprep.subr.bf16.mxu1 %v658_v11  ;;  %v668_v45 = vpack.c.bf16 %v90_v41, %v89_v38  ;;  %v108_v48 = vld [vmem:[#allocation5 + $0x208] sm:$0xff]  ;;  %v125_v49 = vld [vmem:[#allocation5 + $0x290] sm:$0xff]  ;;  %v126_v50 = vld [vmem:[#allocation5 + $0x298] sm:$0xff] }
  0x3e   :  { %629 = vmatpush3.bf16.msra.mxu0 %v628_v16  ;;  %326 = vmatprep.mubr.f32.mxu1 %v166_v39  ;;  %v672_v51 = vpack.c.bf16 %v108_v48, %v107_v47  ;;  %v42_v52 = vld [vmem:[#allocation2 + $0x8] sm:$0x3f]  ;;  %v139_v53 = vld [vmem:[#allocation5 + $0x300] sm:$0xff]  ;;  %v674_v54 = vpack.c.bf16 %v126_v50, %v125_v49  ;;  %v109_v55 = vld [vmem:[#allocation5 + $0x210] sm:$0xff] }
  0x3f   :  { %631 = vmatprep.subr.bf16.mxu0 %v630_v19  ;;  %v110_v56 = vld [vmem:[#allocation5 + $0x218] sm:$0xff]  ;;  %v167_v57 = vcombine.high %v42_v52, %v42_v52  ;;  %v853_v58 = vrot.slane %v42_v52, %v848_v10  ;;  %v140_v59 = vld [vmem:[#allocation5 + $0x308] sm:$0xff]  ;;  %v127_v60 = vld [vmem:[#allocation5 + $0x2a0] sm:$0xff] }
  0x40   :  { %661 = vmatpush3.bf16.msra.mxu1 %v660_v17  ;;  %v128_v61 = vld [vmem:[#allocation5 + $0x2a8] sm:$0xff]  ;;  %v703_v63 = vpack.c.bf16 %v140_v59, %v139_v53  ;;  %v676_v1 = vpack.c.bf16 %v110_v56, %v109_v55  ;;  %v111_v3 = vld [vmem:[#allocation5 + $0x220] sm:$0xff]  ;;  %v129_v6 = vld [vmem:[#allocation5 + $0x2b0] sm:$0xff] }
  0x41   :  { %663 = vmatprep.subr.bf16.mxu1 %v662_v25  ;;  %v182_v0 = vcombine.high %v853_v58, %v853_v58  ;;  %v678_v2 = vpack.c.bf16 %v128_v61, %v127_v60  ;;  %v112_v4 = vld [vmem:[#allocation5 + $0x228] sm:$0xff]  ;;  %v181_v5 = vrot.slane %v167_v57, %v848_v10  ;;  %v130_v7 = vld [vmem:[#allocation5 + $0x2b8] sm:$0xff]  ;;  %v113_v12 = vld [vmem:[#allocation5 + $0x230] sm:$0xff] }
  0x42   :  { %633 = vmatpush3.bf16.msra.mxu0 %v632_v33  ;;  %v680_v9 = vpack.c.bf16 %v112_v4, %v111_v3  ;;  %v682_v11 = vpack.c.bf16 %v130_v7, %v129_v6  ;;  %v114_v13 = vld [vmem:[#allocation5 + $0x238] sm:$0xff]  ;;  %v131_v14 = vld [vmem:[#allocation5 + $0x2c0] sm:$0xff]  ;;  %v132_v15 = vld [vmem:[#allocation5 + $0x2c8] sm:$0xff] }
  0x43   :  { %635 = vmatprep.subr.bf16.mxu0 %v634_v35  ;;  %v684_v16 = vpack.c.bf16 %v114_v13, %v113_v12  ;;  %v686_v10 = vpack.c.bf16 %v132_v15, %v131_v14  ;;  %v115_v17 = vld [vmem:[#allocation5 + $0x240] sm:$0xff]  ;;  %v116_v18 = vld [vmem:[#allocation5 + $0x248] sm:$0xff]  ;;  %v133_v19 = vld [vmem:[#allocation5 + $0x2d0] sm:$0xff] }
  0x44   :  { %665 = vmatpush3.bf16.msra.mxu1 %v664_v34  ;;  %v134_v20 = vld [vmem:[#allocation5 + $0x2d8] sm:$0xff]  ;;  %v688_v21 = vpack.c.bf16 %v116_v18, %v115_v17  ;;  %v135_v25 = vld [vmem:[#allocation5 + $0x2e0] sm:$0xff]  ;;  %v136_v26 = vld [vmem:[#allocation5 + $0x2e8] sm:$0xff] }
  0x45   :  { %667 = vmatprep.subr.bf16.mxu1 %v666_v40  ;;  %v690_v22 = vpack.c.bf16 %v134_v20, %v133_v19  ;;  %v118_v24 = vld [vmem:[#allocation5 + $0x258] sm:$0xff]  ;;  %v694_v28 = vpack.c.bf16 %v136_v26, %v135_v25  ;;  %v119_v29 = vld [vmem:[#allocation5 + $0x260] sm:$0xff]  ;;  %v120_v30 = vld [vmem:[#allocation5 + $0x268] sm:$0xff] }
  0x46   :  { %637 = vmatpush3.bf16.msra.mxu0 %v636_v44  ;;  %v137_v31 = vld [vmem:[#allocation5 + $0x2f0] sm:$0xff]  ;;  %v696_v33 = vpack.c.bf16 %v120_v30, %v119_v29  ;;  %v122_v36 = vld [vmem:[#allocation5 + $0x278] sm:$0xff] }
  0x47   :  { %671 = vmatprep.subr.bf16.mxu0 %v670_v46  ;;  %v121_v35 = vld [vmem:[#allocation5 + $0x270] sm:$0xff] }
  0x48   :  { %669 = vmatpush3.bf16.msra.mxu1 %v668_v45  ;;  %v700_v37 = vpack.c.bf16 %v122_v36, %v121_v35  ;;  %v489_v39 = vld [vmem:[%s876_s2] ss:$0 sm:$0xff] }
  0x49   :  { %702 = vmatprep.subr.bf16.mxu1 %v793_v62  ;;  %257 = vmatmul.mubr.f32.vlgmr.msra.gmra.mrb[0].mxu0 %v157_v23  ;;  %v117_v23 = vld [vmem:[#allocation5 + $0x250] sm:$0xff] }
  0x4a   :  { %673 = vmatpush3.bf16.msra.mxu0 %v672_v51  ;;  %396 = vmatprep.mubr.f32.mxu0 %v182_v0  ;;  %v692_v27 = vpack.c.bf16 %v118_v24, %v117_v23 }
  0x4b   :  { %327 = vmatmul.mubr.f32.vlgmr.msra.gmra.mrb[0].mxu1 %v164_v32  ;;  %675 = vmatprep.subr.bf16.mxu0 %v674_v54  ;;  %v138_v32 = vld [vmem:[#allocation5 + $0x2f8] sm:$0xff] }
  0x4c   :  { %704 = vmatpush3.bf16.msra.mxu1 %v703_v63  ;;  %603 = vmatprep.mubr.msk.f32.mxu1 %vm794_vm0, %v795_v8  ;;  %v698_v34 = vpack.c.bf16 %v138_v32, %v137_v31 }
  0x4e   :  { %677 = vmatpush3.bf16.msra.mxu0 %v676_v1 }
  0x4f   :  { %679 = vmatprep.subr.bf16.mxu0 %v678_v2  ;;  %604 = vmatmul.mubr.msk.f32.vlgmr.msra.gmra.mrb[2].mxu1 %vm189_vm1, %v181_v5 }
  0x52   :  { %681 = vmatpush3.bf16.msra.mxu0 %v680_v9 }
  0x53   :  { %683 = vmatprep.subr.bf16.mxu0 %v682_v11 }
  0x56   :  { %685 = vmatpush3.bf16.msra.mxu0 %v684_v16 }
  0x57   :  { %687 = vmatprep.subr.bf16.mxu0 %v686_v10 }
  0x5a   :  { %689 = vmatpush3.bf16.msra.mxu0 %v688_v21 }
  0x5b   :  { %691 = vmatprep.subr.bf16.mxu0 %v690_v22 }
  0x5e   :  { %693 = vmatpush3.bf16.msra.mxu0 %v692_v27 }
  0x5f   :  { %695 = vmatprep.subr.bf16.mxu0 %v694_v28 }
  0x62   :  { %697 = vmatpush3.bf16.msra.mxu0 %v696_v33 }
  0x63   :  { %699 = vmatprep.subr.bf16.mxu0 %v698_v34 }
  0x66   :  { %701 = vmatpush3.bf16.msra.mxu0 %v700_v37 }
  0x69   :  { %397 = vmatmul.mubr.f32.vlgmr.msra.gmra.mrb[2].mxu0 %v853_v58 }
 0x11c   :  { %v523_v38 = vpop.f32.mrb[0].mxu0 }
 0x11d   :  { %v524_v40 = vpop.f32.mrb[1].mxu0 }
 0x11e   :  { %v558_v41 = vpop.f32.mrb[0].mxu1  ;;  %v525_v42 = vadd.f32 %v524_v40, %v523_v38 }
 0x11f   :  { %v559_v43 = vpop.f32.mrb[1].mxu1 }
 0x120   :  { %v560_v44 = vadd.f32 %v559_v43, %v558_v41  ;;  %v259_v45 = vadd.f32 %v525_v42, %v489_v39 }
 0x122   :  { %v329_v46 = vadd.f32 %v560_v44, %v259_v45  ;;  %v468_v47 = vpop.f32.mrb[2].mxu1 }
 0x123   :  { %v605_v48 = vpop.f32.mrb[3].mxu1 }
 0x13c   :  { %v593_v49 = vpop.f32.mrb[2].mxu0 }
 0x13d   :  { %v594_v50 = vpop.f32.mrb[3].mxu0 }
 0x13e   :  { %v595_v51 = vadd.f32 %v594_v50, %v593_v49 }
 0x140   :  { %v399_v52 = vadd.f32 %v595_v51, %v329_v46 }
 0x142   :  { %v469_v53 = vadd.f32 %v468_v47, %v399_v52 }
 0x144   :  { %472 = vst [vmem:[#allocation7] sm:$0x3] %v469_v53 }
 0x145   :  { %771 = shalt.err (!%p768_p6)
}
 0x146   :  { %s772_s15 = scalar_lea.hbm %s877_s3, 32 }
 0x147   :  { %p773_p7 = scmp.ne.s32.totalorder %s877_s3, %s772_s15  ;;  %p776_p8 = scmp.lt.u32.totalorder %s772_s15, %s877_s3 }
 0x149   :  { %p778_p9 = pnand %p776_p8, %p773_p7 }
 0x14b   :  { %781 = shalt.err (!%p778_p9)
}
 0x14c   :  { %482 = dma.vmem_to_hbm [thread:$0]  %s480_s12, 32, %s877_s3, [#allocation4]  }
 0x14d   :  { %786 = dma.done.wait [#allocation4], 32  }
 0x14e   :  { %787 = vsyncadd [#allocation4], 4294967264 }
 0x14f   :  { %486 = vsyncpa [#allocation3], 1 }
 0x150   :  { %487 = vsyncpa [#allocation6], 1 }
 0x151   :  { %488 = vsyncpa [#allocation4], 1 }

</bundles_post_ra>
